<compile_context>
chip_gen: v5e
topology: v5e:2x2
jax: 0.10.0
libtpu: 0.0.40
codegen_flags: <defaults>
</compile_context>

<pallas_src>
import functools

import jax
import jax.numpy as jnp
from jax.experimental import pallas as pl
from jax.experimental.pallas import tpu as pltpu


def _leaky_relu(x, slope=0.2):
    # Matches nn.LeakyReLU(0.2) in the PyTorch module.
    return jnp.where(x > 0, x, slope * x)


def _round_up(n, m):
    return (n + m - 1) // m * m


def mlp_kernel(x_ref, w1_ref, b1_ref, w2_ref, b2_ref, w3_ref, b3_ref, o_ref):
    # Fully fused MLP for one batch tile; all weights/biases are VMEM-resident.
    x = x_ref[...]                      # bf16 (bb, D) straight into the MXU
    b1 = b1_ref[...]                    # f32 biases, loaded once
    b2 = b2_ref[...]
    b3 = b3_ref[...]

    h1 = jnp.dot(x, w1_ref[...], preferred_element_type=jnp.float32) + b1
    h1 = _leaky_relu(h1)
    # Dropout(0.3): identity in eval mode.

    h2 = jnp.dot(h1.astype(jnp.bfloat16), w2_ref[...],
                 preferred_element_type=jnp.float32) + b2
    h2 = _leaky_relu(h2)

    out = jnp.dot(h2.astype(jnp.bfloat16), w3_ref[...],
                  preferred_element_type=jnp.float32) + b3
    o_ref[...] = out.astype(o_ref.dtype)


def init_params(key, feature_dim, out_dim=3, h1=256, h2=128, out_pad=128):
    """PyTorch-style uniform(+-1/sqrt(fan_in)) init; weights stored bf16, biases f32.

    The final layer is zero-padded out_dim -> out_pad lanes so the kernel output block
    is lane-dense; the wrapper slices back to out_dim.
    """
    ks = jax.random.split(key, 6)

    def _unif(k, shape, fan_in):
        bound = 1.0 / jnp.sqrt(jnp.float32(fan_in))
        return jax.random.uniform(k, shape, jnp.float32, -bound, bound)

    w1 = _unif(ks[0], (feature_dim, h1), feature_dim)
    b1 = _unif(ks[1], (1, h1), feature_dim)
    w2 = _unif(ks[2], (h1, h2), h1)
    b2 = _unif(ks[3], (1, h2), h1)
    w3 = _unif(ks[4], (h2, out_dim), h2)
    b3 = _unif(ks[5], (1, out_dim), h2)

    w3p = jnp.zeros((h2, out_pad), jnp.float32).at[:, :out_dim].set(w3)
    b3p = jnp.zeros((1, out_pad), jnp.float32).at[:, :out_dim].set(b3)

    params = (w1.astype(jnp.bfloat16), b1,
              w2.astype(jnp.bfloat16), b2,
              w3p.astype(jnp.bfloat16), b3p)
    return params, out_dim


@functools.partial(jax.jit, static_argnames=("out_dim", "block_b"))
def local_discriminator(x, params, out_dim=3, block_b=256):
    w1, b1, w2, b2, w3p, b3p = params
    B, D = x.shape
    out_pad = w3p.shape[1]

    # bf16 operands into the MXU; halves x DMA traffic.
    x = x.astype(jnp.bfloat16)

    # Pick the batch tile: whole (sublane-aligned) batch for small B, otherwise block_b
    # rows so large batches keep >= 2 parallel grid steps (v7x dual TensorCore).
    ROW_ALIGN = 16  # bf16 sublane packing
    bb = min(block_b, _round_up(B, ROW_ALIGN))
    Bp = _round_up(B, bb)
    if Bp != B:
        x = jnp.pad(x, ((0, Bp - B), (0, 0)))

    out = pl.pallas_call(
        mlp_kernel,
        out_shape=jax.ShapeDtypeStruct((Bp, out_pad), jnp.float32),
        grid_spec=pltpu.PrefetchScalarGridSpec(
            num_scalar_prefetch=0,
            grid=(Bp // bb,),
            in_specs=[
                pl.BlockSpec((bb, D), lambda i: (i, 0)),
                # Weight/bias blocks: whole-array, constant index_map -> DMA'd once
                # and kept VMEM-resident across batch tiles.
                pl.BlockSpec(w1.shape, lambda i: (0, 0)),
                pl.BlockSpec(b1.shape, lambda i: (0, 0)),
                pl.BlockSpec(w2.shape, lambda i: (0, 0)),
                pl.BlockSpec(b2.shape, lambda i: (0, 0)),
                pl.BlockSpec(w3p.shape, lambda i: (0, 0)),
                pl.BlockSpec(b3p.shape, lambda i: (0, 0)),
            ],
            out_specs=pl.BlockSpec((bb, out_pad), lambda i: (i, 0)),
        ),
        compiler_params=pltpu.CompilerParams(
            dimension_semantics=("parallel",)),
    )(x, w1, b1, w2, b2, w3p, b3p)
    return out[:B, :out_dim]


def reference(x, params, out_dim=3):
    # Same math as the kernel: bf16 operands, f32 accumulation, f32 bias/activation.
    w1, b1, w2, b2, w3p, b3p = params
    xb = x.astype(jnp.bfloat16)
    h1 = jnp.dot(xb, w1, preferred_element_type=jnp.float32) + b1
    h1 = _leaky_relu(h1)
    h2 = jnp.dot(h1.astype(jnp.bfloat16), w2, preferred_element_type=jnp.float32) + b2
    h2 = _leaky_relu(h2)
    out = jnp.dot(h2.astype(jnp.bfloat16), w3p, preferred_element_type=jnp.float32) + b3p
    return out[:, :out_dim]


if __name__ == "__main__":
    key = jax.random.PRNGKey(0)
    k_x, k_p, k_x2 = jax.random.split(key, 3)

    # Small demo batch (single whole-batch tile).
    batch, feature_dim = 8, 64
    x = jax.random.normal(k_x, (batch, feature_dim), jnp.float32)
    params, out_dim = init_params(k_p, feature_dim)

    y = local_discriminator(x, params, out_dim=out_dim)
    y = jax.block_until_ready(y)
    y_ref = reference(x, params, out_dim=out_dim)
    assert y.shape == (batch, 3)
    assert jnp.allclose(y, y_ref, atol=1e-2, rtol=1e-2)

    # Larger, non-divisible batch: exercises padding + multi-step (>=2) parallel grid.
    batch2 = 500
    x2 = jax.random.normal(k_x2, (batch2, feature_dim), jnp.float32)
    y2 = jax.block_until_ready(local_discriminator(x2, params, out_dim=out_dim))
    y2_ref = reference(x2, params, out_dim=out_dim)
    assert y2.shape == (batch2, 3)
    assert jnp.allclose(y2, y2_ref, atol=1e-2, rtol=1e-2)

    print("KERNEL_OK")
</pallas_src>

<mosaic_0001>
module attributes {stable_mosaic.version = 11 : i64} {
  func.func @mlp_kernel(%arg0: i32, %arg1: memref<16x64xbf16, #tpu.memory_space<vmem>>, %arg2: memref<64x256xbf16, #tpu.memory_space<vmem>>, %arg3: memref<1x256xf32, #tpu.memory_space<vmem>>, %arg4: memref<256x128xbf16, #tpu.memory_space<vmem>>, %arg5: memref<1x128xf32, #tpu.memory_space<vmem>>, %arg6: memref<128x128xbf16, #tpu.memory_space<vmem>>, %arg7: memref<1x128xf32, #tpu.memory_space<vmem>>, %arg8: memref<16x128xf32, #tpu.memory_space<vmem>>) attributes {dimension_semantics = [#tpu.dimension_semantics<parallel>], iteration_bounds = array<i64: 1>, scalar_prefetch = 0 : i64, scratch_operands = 0 : i64, tpu.core_type = #tpu.core_type<tc>, window_params = [{transform_indices = @transform_0, window_bounds = array<i64: 16, 64>}, {pipeline_mode = #tpu.pipeline_mode<synchronous>, transform_indices = @transform_1, window_bounds = array<i64: 64, 256>}, {pipeline_mode = #tpu.pipeline_mode<synchronous>, transform_indices = @transform_2, window_bounds = array<i64: 1, 256>}, {pipeline_mode = #tpu.pipeline_mode<synchronous>, transform_indices = @transform_3, window_bounds = array<i64: 256, 128>}, {pipeline_mode = #tpu.pipeline_mode<synchronous>, transform_indices = @transform_4, window_bounds = array<i64: 1, 128>}, {pipeline_mode = #tpu.pipeline_mode<synchronous>, transform_indices = @transform_5, window_bounds = array<i64: 128, 128>}, {pipeline_mode = #tpu.pipeline_mode<synchronous>, transform_indices = @transform_6, window_bounds = array<i64: 1, 128>}, {transform_indices = @transform_7, window_bounds = array<i64: 16, 128>}]} {
    %c0 = arith.constant 0 : index
    %c0_0 = arith.constant 0 : index
    %0 = vector.load %arg1[%c0, %c0_0] : memref<16x64xbf16, #tpu.memory_space<vmem>>, vector<16x64xbf16>
    %c0_1 = arith.constant 0 : index
    %c0_2 = arith.constant 0 : index
    %1 = vector.load %arg3[%c0_1, %c0_2] : memref<1x256xf32, #tpu.memory_space<vmem>>, vector<1x256xf32>
    %c0_3 = arith.constant 0 : index
    %c0_4 = arith.constant 0 : index
    %2 = vector.load %arg5[%c0_3, %c0_4] : memref<1x128xf32, #tpu.memory_space<vmem>>, vector<1x128xf32>
    %c0_5 = arith.constant 0 : index
    %c0_6 = arith.constant 0 : index
    %3 = vector.load %arg7[%c0_5, %c0_6] : memref<1x128xf32, #tpu.memory_space<vmem>>, vector<1x128xf32>
    %c0_7 = arith.constant 0 : index
    %c0_8 = arith.constant 0 : index
    %4 = vector.load %arg2[%c0_7, %c0_8] : memref<64x256xbf16, #tpu.memory_space<vmem>>, vector<64x256xbf16>
    %cst = arith.constant dense<0.000000e+00> : vector<16x256xf32>
    %5 = tpu.matmul %0, %4, %cst {dimension_numbers = #tpu.dot_dimension_numbers<[1], [0], [0], [1], [0, 0, 1, 1], [], []>} : vector<16x64xbf16>, vector<64x256xbf16>, vector<16x256xf32> -> vector<16x256xf32>
    %6 = vector.broadcast %1 : vector<1x256xf32> to vector<16x256xf32>
    %7 = arith.addf %5, %6 : vector<16x256xf32>
    %cst_9 = arith.constant 0.000000e+00 : f32
    %8 = vector.broadcast %cst_9 : f32 to vector<16x256xf32>
    %9 = arith.cmpf ogt, %7, %8 : vector<16x256xf32>
    %cst_10 = arith.constant 2.000000e-01 : f32
    %10 = vector.broadcast %cst_10 : f32 to vector<16x256xf32>
    %11 = arith.mulf %10, %7 : vector<16x256xf32>
    %12 = arith.select %9, %7, %11 : vector<16x256xi1>, vector<16x256xf32>
    %13 = arith.truncf %12 : vector<16x256xf32> to vector<16x256xbf16>
    %c0_11 = arith.constant 0 : index
    %c0_12 = arith.constant 0 : index
    %14 = vector.load %arg4[%c0_11, %c0_12] : memref<256x128xbf16, #tpu.memory_space<vmem>>, vector<256x128xbf16>
    %cst_13 = arith.constant dense<0.000000e+00> : vector<16x128xf32>
    %15 = tpu.matmul %13, %14, %cst_13 {dimension_numbers = #tpu.dot_dimension_numbers<[1], [0], [0], [1], [0, 0, 1, 1], [], []>} : vector<16x256xbf16>, vector<256x128xbf16>, vector<16x128xf32> -> vector<16x128xf32>
    %16 = vector.broadcast %2 : vector<1x128xf32> to vector<16x128xf32>
    %17 = arith.addf %15, %16 : vector<16x128xf32>
    %cst_14 = arith.constant 0.000000e+00 : f32
    %18 = vector.broadcast %cst_14 : f32 to vector<16x128xf32>
    %19 = arith.cmpf ogt, %17, %18 : vector<16x128xf32>
    %cst_15 = arith.constant 2.000000e-01 : f32
    %20 = vector.broadcast %cst_15 : f32 to vector<16x128xf32>
    %21 = arith.mulf %20, %17 : vector<16x128xf32>
    %22 = arith.select %19, %17, %21 : vector<16x128xi1>, vector<16x128xf32>
    %23 = arith.truncf %22 : vector<16x128xf32> to vector<16x128xbf16>
    %c0_16 = arith.constant 0 : index
    %c0_17 = arith.constant 0 : index
    %24 = vector.load %arg6[%c0_16, %c0_17] : memref<128x128xbf16, #tpu.memory_space<vmem>>, vector<128x128xbf16>
    %cst_18 = arith.constant dense<0.000000e+00> : vector<16x128xf32>
    %25 = tpu.matmul %23, %24, %cst_18 {dimension_numbers = #tpu.dot_dimension_numbers<[1], [0], [0], [1], [0, 0, 1, 1], [], []>} : vector<16x128xbf16>, vector<128x128xbf16>, vector<16x128xf32> -> vector<16x128xf32>
    %26 = vector.broadcast %3 : vector<1x128xf32> to vector<16x128xf32>
    %27 = arith.addf %25, %26 : vector<16x128xf32>
    %c0_19 = arith.constant 0 : index
    %c0_20 = arith.constant 0 : index
    %28 = vector.load %arg8[%c0_19, %c0_20] : memref<16x128xf32, #tpu.memory_space<vmem>>, vector<16x128xf32>
    tpu.vector_store %arg8[%c0_19, %c0_20], %27 {strides = array<i32>} : memref<16x128xf32, #tpu.memory_space<vmem>>, vector<16x128xf32>,
    return
  }
  func.func @transform_0(%arg0: i32) -> (i32, i32) {
    %c0_i32 = arith.constant 0 : i32
    %c0_i32_0 = arith.constant 0 : i32
    return %arg0, %c0_i32 : i32, i32
  }
  func.func @transform_1(%arg0: i32) -> (i32, i32) {
    %c0_i32 = arith.constant 0 : i32
    %c0_i32_0 = arith.constant 0 : i32
    %c0_i32_1 = arith.constant 0 : i32
    return %c0_i32, %c0_i32_0 : i32, i32
  }
  func.func @transform_2(%arg0: i32) -> (i32, i32) {
    %c0_i32 = arith.constant 0 : i32
    %c0_i32_0 = arith.constant 0 : i32
    %c0_i32_1 = arith.constant 0 : i32
    return %c0_i32, %c0_i32_0 : i32, i32
  }
  func.func @transform_3(%arg0: i32) -> (i32, i32) {
    %c0_i32 = arith.constant 0 : i32
    %c0_i32_0 = arith.constant 0 : i32
    %c0_i32_1 = arith.constant 0 : i32
    return %c0_i32, %c0_i32_0 : i32, i32
  }
  func.func @transform_4(%arg0: i32) -> (i32, i32) {
    %c0_i32 = arith.constant 0 : i32
    %c0_i32_0 = arith.constant 0 : i32
    %c0_i32_1 = arith.constant 0 : i32
    return %c0_i32, %c0_i32_0 : i32, i32
  }
  func.func @transform_5(%arg0: i32) -> (i32, i32) {
    %c0_i32 = arith.constant 0 : i32
    %c0_i32_0 = arith.constant 0 : i32
    %c0_i32_1 = arith.constant 0 : i32
    return %c0_i32, %c0_i32_0 : i32, i32
  }
  func.func @transform_6(%arg0: i32) -> (i32, i32) {
    %c0_i32 = arith.constant 0 : i32
    %c0_i32_0 = arith.constant 0 : i32
    %c0_i32_1 = arith.constant 0 : i32
    return %c0_i32, %c0_i32_0 : i32, i32
  }
  func.func @transform_7(%arg0: i32) -> (i32, i32) {
    %c0_i32 = arith.constant 0 : i32
    %c0_i32_0 = arith.constant 0 : i32
    return %arg0, %c0_i32 : i32, i32
  }
}

</mosaic_0001>

<bundles_post_ra>
// kernel: local_discriminator.1
= control target key start
LH: loop header
LB: loop body
LE: loop exit
PB: predicated region body
PF: predicated region fallthrough
CT: control target
= control target key end

     0   :  { %12 = vsyncpa [#allocation3], 0  ;;  %s766_s0 = inlined_call_operand.vmem [shape: bf16[16,64], index: 0, kind: input, shape index: {}]   ;;  %s767_s1 = inlined_call_operand.hbm [shape: bf16[64,256], index: 1, kind: input, shape index: {}]   ;;  %s768_s2 = inlined_call_operand.vmem [shape: f32[1,256], index: 2, kind: input, shape index: {}]   ;;  %s769_s3 = inlined_call_operand.hbm [shape: bf16[256,128], index: 3, kind: input, shape index: {}]   ;;  %s770_s4 = inlined_call_operand.vmem [shape: f32[1,128], index: 4, kind: input, shape index: {}]   ;;  %s771_s5 = inlined_call_operand.hbm [shape: bf16[128,128], index: 5, kind: input, shape index: {}]   ;;  %s772_s6 = inlined_call_operand.vmem [shape: f32[1,128], index: 6, kind: input, shape index: {}]   ;;  %s773_s7 = inlined_call_operand.vmem [shape: f32[16,128], index: 7, kind: output, shape index: {}]  }
   0x1   :  { %13 = vsyncpa [#allocation5], 0  ;;  %s35_s26 = sshll.u32 %s769_s3, 4  ;;  %s690_s27 = smov [#allocation4]   ;;  %s36_s26 = int_to_ptr.hbm [resolvable:$true] %s35_s26 }
   0x2   :  { %s37_s28 = sshll.u32 %s690_s27, 4  ;;  %s20_s8 = sshll.u32 %s767_s1, 4  ;;  %s38_s28 = int_to_ptr.vmem [resolvable:$true] %s37_s28  ;;  %s21_s8 = int_to_ptr.hbm [resolvable:$true] %s20_s8 }
   0x3   :  { %s691_s9 = smov 64   ;;  %s692_s10 = smov 4  }
   0x4   :  { %43 = dma.hbm_to_vmem [thread:$0]  %s36_s26, 2048, %s38_s28, [#allocation5], %s691_s9, %s691_s9, %s692_s10  }
   0x5   :  { %s693_s11 = smov [#allocation2]   ;;  %s694_s13 = smov 128  }
   0x6   :  { %s22_s12 = sshll.u32 %s693_s11, 4  ;;  %s695_s14 = smov 8   ;;  %s23_s12 = int_to_ptr.vmem [resolvable:$true] %s22_s12 }
   0x7   :  { %28 = dma.hbm_to_vmem [thread:$0]  %s21_s8, 1024, %s23_s12, [#allocation3], %s694_s13, %s694_s13, %s695_s14  }
   0x8   :  { %s50_s16 = sshll.u32 %s771_s5, 4  ;;  %s696_s17 = smov [#allocation6]   ;;  %s51_s16 = int_to_ptr.hbm [resolvable:$true] %s50_s16 }
   0x9   :  { %s52_s18 = sshll.u32 %s696_s17, 4  ;;  %s53_s18 = int_to_ptr.vmem [resolvable:$true] %s52_s18 }
   0xa   :  { %58 = dma.hbm_to_vmem [thread:$0]  %s51_s16, 1024, %s53_s18, [#allocation5], %s691_s9, %s691_s9, %s692_s10  }
   0xb   :  { %686 = dma.done.wait [#allocation3], 1024  }
   0xc   :  { %687 = vsyncadd [#allocation3], 4294966272 }
   0xd   :  { %688 = dma.done.wait [#allocation5], 3072  }
   0xe   :  { %689 = vsyncadd [#allocation5], 4294964224  ;;  %v468_v0 = vld [vmem:[#allocation2 + $0x30] sm:$0xf]  ;;  %v580_v1 = vld [vmem:[#allocation2 + $0x34] sm:$0xf0] }
   0xf   :  { %v460_v2 = vld [vmem:[#allocation2 + $0x20] sm:$0xf]  ;;  %v469_v3 = vor.u32 %v580_v1, %v468_v0  ;;  %v578_v4 = vld [vmem:[#allocation2 + $0x24] sm:$0xf0]  ;;  %v452_v6 = vld [vmem:[#allocation2 + $0x10] sm:$0xf] }
  0x10   :  { %v461_v5 = vor.u32 %v578_v4, %v460_v2  ;;  %v576_v7 = vld [vmem:[#allocation2 + $0x14] sm:$0xf0]  ;;  %v587_v10 = vld [vmem:[#allocation4 + $0x30] sm:$0xff]  ;;  %v444_v11 = vld [vmem:[#allocation2] sm:$0xf]  ;;  %vm137_vm0 = vcmask 523264  }
  0x11   :  { %145 = vmatpush.bf16.msra.mxu1 %v469_v3  ;;  %v588_v8 = vld [vmem:[#allocation4 + $0x38] sm:$0xff]  ;;  %v453_v9 = vor.u32 %v576_v7, %v452_v6  ;;  %v574_v12 = vld [vmem:[#allocation2 + $0x4] sm:$0xf0]  ;;  %v579_v13 = vld [vmem:[#allocation2 + $0x34] sm:$0xf] }
  0x12   :  { %314 = vmatpush.bf16.msra.mxu2 %v588_v8  ;;  %v470_v14 = vld [vmem:[#allocation2 + $0x38] sm:$0xf0]  ;;  %v445_v15 = vor.u32 %v574_v12, %v444_v11  ;;  %v586_v16 = vld [vmem:[#allocation4 + $0x28] sm:$0xff]  ;;  %v577_v18 = vld [vmem:[#allocation2 + $0x24] sm:$0xf] }
  0x13   :  { %v473_v17 = vor.u32 %v579_v13, %v470_v14  ;;  %v462_v19 = vld [vmem:[#allocation2 + $0x28] sm:$0xf0]  ;;  %v572_v20 = vld [vmem:[%s766_s0] sm:$0xff]  ;;  %v575_v23 = vld [vmem:[#allocation2 + $0x14] sm:$0xf] }
  0x14   :  { %v585_v21 = vld [vmem:[#allocation4 + $0x20] sm:$0xff]  ;;  %v465_v22 = vor.u32 %v577_v18, %v462_v19  ;;  %v454_v24 = vld [vmem:[#allocation2 + $0x18] sm:$0xf0]  ;;  %v446_v27 = vld [vmem:[#allocation2 + $0x8] sm:$0xf0] }
  0x15   :  { %146 = vmatpush.bf16.msra.mxu1 %v461_v5  ;;  %v457_v25 = vor.u32 %v575_v23, %v454_v24  ;;  %v573_v26 = vld [vmem:[#allocation2 + $0x4] sm:$0xf]  ;;  %v584_v29 = vld [vmem:[#allocation4 + $0x18] sm:$0xff]  ;;  %v583_v31 = vld [vmem:[#allocation4 + $0x10] sm:$0xff] }
  0x16   :  { %315 = vmatpush.bf16.msra.mxu2 %v587_v10  ;;  %v449_v28 = vor.u32 %v573_v26, %v446_v27  ;;  %v596_v30 = vld [vmem:[#allocation4 + $0x78] sm:$0xff]  ;;  %v595_v32 = vld [vmem:[#allocation4 + $0x70] sm:$0xff]  ;;  %v582_v33 = vld [vmem:[#allocation4 + $0x8] sm:$0xff] }
  0x17   :  { %328 = vmatpush.bf16.msra.mxu3 %v596_v30  ;;  %v594_v34 = vld [vmem:[#allocation4 + $0x68] sm:$0xff]  ;;  %v581_v35 = vld [vmem:[#allocation4] sm:$0xff]  ;;  %v592_v37 = vld [vmem:[#allocation4 + $0x58] sm:$0xff] }
  0x18   :  { %v593_v36 = vld [vmem:[#allocation4 + $0x60] sm:$0xff]  ;;  %v591_v38 = vld [vmem:[#allocation4 + $0x50] sm:$0xff]  ;;  %v590_v39 = vld [vmem:[#allocation4 + $0x48] sm:$0xff] }
  0x19   :  { %147 = vmatpush.bf16.msra.mxu1 %v453_v9  ;;  %v589_v40 = vld [vmem:[#allocation4 + $0x40] sm:$0xff]  ;;  %v604_v62 = vld [vmem:[#allocation6 + $0x38] sm:$0xff]  ;;  %v603_v63 = vld [vmem:[#allocation6 + $0x30] sm:$0xff] }
  0x1a   :  { %316 = vmatpush.bf16.msra.mxu2 %v586_v16  ;;  %v76_v41 = vld [vmem:[%s768_s2] sm:$0x3]  ;;  %416 = vmatpush.bf16.msra.mxu0 %v604_v62  ;;  %v602_v0 = vld [vmem:[#allocation6 + $0x28] sm:$0xff]  ;;  %v600_v2 = vld [vmem:[#allocation6 + $0x18] sm:$0xff] }
  0x1b   :  { %329 = vmatpush.bf16.msra.mxu3 %v595_v32  ;;  %v88_v43 = vperm.slane %v76_v41, 0  ;;  %v89_v53 = vperm.slane %v76_v41, 1  ;;  %v601_v1 = vld [vmem:[#allocation6 + $0x20] sm:$0xff]  ;;  %v599_v3 = vld [vmem:[#allocation6 + $0x10] sm:$0xff]  ;;  %v598_v4 = vld [vmem:[#allocation6 + $0x8] sm:$0xff] }
  0x1c   :  { %v597_v5 = vld [vmem:[#allocation6] sm:$0xff] }
  0x1d   :  { %148 = vmatpush.bf16.msra.mxu1 %v445_v15  ;;  %v612_v7 = vld [vmem:[%s770_s4] ss:$0 sm:$0xff] }
  0x1e   :  { %317 = vmatpush.bf16.msra.mxu2 %v585_v21  ;;  %417 = vmatpush.bf16.msra.mxu0 %v603_v63 }
  0x1f   :  { %330 = vmatpush.bf16.msra.mxu3 %v594_v34 }
  0x20   :  { %474 = vmatmul.msk.bf16.vlgmr.msra.gmra.mxu1 %vm137_vm0, %v572_v20 }
  0x21   :  { %159 = vmatpush.bf16.msrb.mxu1 %v473_v17 }
  0x22   :  { %318 = vmatpush.bf16.msra.mxu2 %v584_v29  ;;  %418 = vmatpush.bf16.msra.mxu0 %v602_v0 }
  0x23   :  { %331 = vmatpush.bf16.msra.mxu3 %v593_v36 }
  0x25   :  { %160 = vmatpush.bf16.msrb.mxu1 %v465_v22 }
  0x26   :  { %319 = vmatpush.bf16.msra.mxu2 %v583_v31  ;;  %419 = vmatpush.bf16.msra.mxu0 %v601_v1 }
  0x27   :  { %332 = vmatpush.bf16.msra.mxu3 %v592_v37 }
  0x29   :  { %161 = vmatpush.bf16.msrb.mxu1 %v457_v25 }
  0x2a   :  { %320 = vmatpush.bf16.msra.mxu2 %v582_v33  ;;  %420 = vmatpush.bf16.msra.mxu0 %v600_v2 }
  0x2b   :  { %333 = vmatpush.bf16.msra.mxu3 %v591_v38 }
  0x2d   :  { %162 = vmatpush.bf16.msrb.mxu1 %v449_v28 }
  0x2e   :  { %321 = vmatpush.bf16.msra.mxu2 %v581_v35  ;;  %421 = vmatpush.bf16.msra.mxu0 %v599_v3 }
  0x2f   :  { %334 = vmatpush.bf16.msra.mxu3 %v590_v39 }
  0x30   :  { %475 = vmatmul.msk.bf16.vlgmr.msrb.gmra.mxu1 %vm137_vm0, %v572_v20  ;;  %v613_v20 = vld [vmem:[%s772_s6] ss:$0 sm:$0xff] }
  0x32   :  { %422 = vmatpush.bf16.msra.mxu0 %v598_v4 }
  0x33   :  { %335 = vmatpush.bf16.msra.mxu3 %v589_v40 }
  0x36   :  { %423 = vmatpush.bf16.msra.mxu0 %v597_v5 }
  0x9d   :  { %v150_v42 = vpop.f32.mrf.mxu1 }
  0x9e   :  { %v151_v44 = vadd.f32 %v150_v42, %v88_v43 }
  0xa0   :  { %v173_v46 = vmul.f32 0.2, %v151_v44  ;;  %vm169_vm1 = vcmp.gt.f32.partialorder %v151_v44, 0.0 }
  0xa2   :  { %v177_v49 = vsel %vm169_vm1, %v151_v44, %v173_v46 }
  0xa5   :  { %v152_v45 = vpop.f32.mrf.mxu1 }
  0xa6   :  { %v153_v47 = vadd.f32 %v152_v45, %v88_v43 }
  0xa8   :  { %v175_v48 = vmul.f32 0.2, %v153_v47  ;;  %vm171_vm2 = vcmp.gt.f32.partialorder %v153_v47, 0.0 }
  0xaa   :  { %v179_v50 = vsel %vm171_vm2, %v153_v47, %v175_v48 }
  0xab   :  { %v181_v51 = vpack.c.bf16 %v179_v50, %v177_v49 }
  0xad   :  { %v164_v52 = vpop.f32.mrf.mxu1  ;;  %322 = vmatmul.bf16.vlgmr.msra.gmra.mxu2 %v181_v51 }
  0xae   :  { %v165_v54 = vadd.f32 %v164_v52, %v89_v53 }
  0xb0   :  { %v174_v56 = vmul.f32 0.2, %v165_v54  ;;  %vm170_vm3 = vcmp.gt.f32.partialorder %v165_v54, 0.0 }
  0xb2   :  { %v178_v59 = vsel %vm170_vm3, %v165_v54, %v174_v56 }
  0xb5   :  { %v166_v55 = vpop.f32.mrf.mxu1 }
  0xb6   :  { %v167_v57 = vadd.f32 %v166_v55, %v89_v53 }
  0xb8   :  { %v176_v58 = vmul.f32 0.2, %v167_v57  ;;  %vm172_vm4 = vcmp.gt.f32.partialorder %v167_v57, 0.0 }
  0xba   :  { %v180_v60 = vsel %vm172_vm4, %v167_v57, %v176_v58 }
  0xbb   :  { %v182_v61 = vpack.c.bf16 %v180_v60, %v178_v59 }
  0xbd   :  { %336 = vmatmul.bf16.vlgmr.msra.gmra.mxu3 %v182_v61 }
 0x130   :  { %v323_v6 = vpop.f32.mrf.mxu2 }
 0x131   :  { %v324_v9 = vadd.f32 %v612_v7, %v323_v6 }
 0x138   :  { %v325_v10 = vpop.f32.mrf.mxu2 }
 0x139   :  { %v326_v12 = vadd.f32 %v612_v7, %v325_v10 }
 0x140   :  { %v337_v8 = vpop.f32.mrf.mxu3 }
 0x141   :  { %v338_v11 = vadd.f32 %v337_v8, %v324_v9 }
 0x143   :  { %v344_v14 = vmul.f32 0.2, %v338_v11  ;;  %vm342_vm5 = vcmp.gt.f32.partialorder %v338_v11, 0.0 }
 0x145   :  { %v346_v17 = vsel %vm342_vm5, %v338_v11, %v344_v14 }
 0x148   :  { %v339_v13 = vpop.f32.mrf.mxu3 }
 0x149   :  { %v340_v15 = vadd.f32 %v339_v13, %v326_v12 }
 0x14b   :  { %v345_v16 = vmul.f32 0.2, %v340_v15  ;;  %vm343_vm6 = vcmp.gt.f32.partialorder %v340_v15, 0.0 }
 0x14d   :  { %v347_v18 = vsel %vm343_vm6, %v340_v15, %v345_v16 }
 0x14e   :  { %v348_v19 = vpack.c.bf16 %v347_v18, %v346_v17 }
 0x150   :  { %424 = vmatmul.bf16.vlgmr.msra.gmra.mxu0 %v348_v19 }
 0x1cd   :  { %v425_v21 = vpop.f32.mrf.mxu0 }
 0x1ce   :  { %v426_v22 = vadd.f32 %v613_v20, %v425_v21 }
 0x1d0   :  { %430 = vst [vmem:[%s773_s7] sm:$0xff] %v426_v22 }
 0x1d5   :  { %v427_v23 = vpop.f32.mrf.mxu0 }
 0x1d6   :  { %v428_v24 = vadd.f32 %v613_v20, %v427_v23 }
 0x1d8   :  { %431 = vst [vmem:[%s773_s7 + $0x8] sm:$0xff] %v428_v24 }
 0x1d9   :  { %436 = vsyncpa [#allocation3], 1 }
 0x1da   :  { %437 = vsyncpa [#allocation5], 1 }

</bundles_post_ra>
